<compile_context>
chip_gen: v5e
topology: v5e:2x2
jax: 0.10.0
libtpu: 0.0.40
codegen_flags: <defaults>
</compile_context>

<pallas_src>
import jax
import jax.numpy as jnp
from jax.experimental import pallas as pl
from jax.experimental.pallas import tpu as pltpu

CIN, H, W = 3, 32, 32                 # spatial must be 32 (fc expects 16*32*32)
COUT, KH, KW = 16, 3, 3
PATCH = KH * KW * CIN                 # 27
HW = H * W                            # 1024
FC_IN = COUT * HW                     # 16384


# ---------------- fused Pallas kernel ----------------

def fused_forward_kernel(pt_ref, wc_ref, bc_ref, wf_ref, bf_ref, o_ref):
    # pt_ref: (27, n*1024) im2col patches^T (features x positions), cols ordered (n,h,w)
    # wc_ref: (16, 27) conv weight, bc_ref: (16, 1) conv bias
    # wf_ref: (16, 1024) fc weight in PyTorch (c,h,w) flatten order, bf_ref: (1, 1)
    # o_ref : (1, n)  -- batch lives on the lane axis
    n = o_ref.shape[1]

    # Conv as one MXU matmul with a lane-dense (16, n*1024) result.
    a = jnp.dot(wc_ref[...], pt_ref[...], preferred_element_type=jnp.float32)
    a = jnp.maximum(a + bc_ref[...], 0.0)                 # bias + ReLU (VPU)

    # FC: per-batch lane-aligned slab multiply + lane reduce (slices are 1024-lane
    # aligned -> no relayout; n is static -> unrolled), then one sublane reduce
    # over the 16 channels for all batches together.
    wf = wf_ref[...]                                      # (16, 1024), read once
    zs = [jnp.sum(a[:, i * HW:(i + 1) * HW] * wf, axis=1, keepdims=True)
          for i in range(n)]                              # n x (16, 1)
    z = jnp.sum(jnp.concatenate(zs, axis=1), axis=0, keepdims=True)   # (1, n)
    z = z + bf_ref[...]                                   # fc bias
    o_ref[...] = 1.0 / (1.0 + jnp.exp(-z))                # sigmoid (EUP)


# ---------------- glue (tiny XLA ops) + wrapper ----------------

def _im2col_T(x_nchw):
    """(n,3,32,32) NCHW -> (27, n*32*32) patches^T; rows ordered (kh, kw, cin)."""
    n = x_nchw.shape[0]
    xc = jnp.transpose(x_nchw, (1, 0, 2, 3))                  # (CIN, n, H, W): 1 transpose
    xp = jnp.pad(xc, ((0, 0), (0, 0), (1, 1), (1, 1)))        # spatial padding=1
    rows = [xp[:, :, kh:kh + H, kw:kw + W].reshape(CIN, n * HW)
            for kh in range(KH) for kw in range(KW)]          # 9 aligned slices
    return jnp.concatenate(rows, axis=0)                      # (27, n*HW)


@jax.jit
def simple_model_forward(x, params):
    w_conv, b_conv, w_fc, b_fc = params                       # PyTorch param shapes
    assert x.shape[1:] == (CIN, H, W), "fc layer requires (3,32,32) inputs"
    n = x.shape[0]

    pt = _im2col_T(x.astype(jnp.float32))                     # (27, n*1024)
    # (Cout,Cin,KH,KW) -> (Cout,KH,KW,Cin) -> (16,27) to match patch row order
    wc = jnp.transpose(w_conv, (0, 2, 3, 1)).reshape(COUT, PATCH).astype(jnp.float32)
    bc = b_conv.reshape(COUT, 1).astype(jnp.float32)
    wf = w_fc.reshape(COUT, HW).astype(jnp.float32)           # PyTorch (c,h,w) flatten order
    bf = b_fc.reshape(1, 1).astype(jnp.float32)

    out = pl.pallas_call(
        fused_forward_kernel,
        out_shape=jax.ShapeDtypeStruct((1, n), jnp.float32),
        grid=(1,),
        in_specs=[pl.BlockSpec((PATCH, n * HW), lambda i: (0, 0)),
                  pl.BlockSpec((COUT, PATCH), lambda i: (0, 0)),
                  pl.BlockSpec((COUT, 1), lambda i: (0, 0)),
                  pl.BlockSpec((COUT, HW), lambda i: (0, 0)),
                  pl.BlockSpec((1, 1), lambda i: (0, 0))],
        out_specs=pl.BlockSpec((1, n), lambda i: (0, 0)),
        compiler_params=pltpu.CompilerParams(
            dimension_semantics=("arbitrary",)),
    )(pt, wc, bc, wf, bf)
    return out.reshape(n, 1)                                  # match PyTorch (N, 1)


if __name__ == "__main__":
    N = 2
    key = jax.random.PRNGKey(0)
    k1, k2, k3, k4, k5 = jax.random.split(key, 5)
    # deterministic synthetic parameters (shapes from SimpleModel.__init__)
    w_conv = jax.random.normal(k1, (COUT, CIN, KH, KW), jnp.float32) * 0.1
    b_conv = jax.random.normal(k2, (COUT,), jnp.float32) * 0.1
    w_fc = jax.random.normal(k3, (1, FC_IN), jnp.float32) * 0.01
    b_fc = jax.random.normal(k4, (1,), jnp.float32) * 0.01
    x = jax.random.normal(k5, (N, CIN, H, W), jnp.float32)

    out = jax.block_until_ready(
        simple_model_forward(x, (w_conv, b_conv, w_fc, b_fc)))

    # pure-JAX reference for a correctness sanity check
    conv_ref = jax.lax.conv_general_dilated(
        x, w_conv, window_strides=(1, 1), padding=((1, 1), (1, 1)),
        dimension_numbers=("NCHW", "OIHW", "NCHW"),
        precision=jax.lax.Precision.HIGHEST)
    conv_ref = jnp.maximum(conv_ref + b_conv[None, :, None, None], 0.0)
    logits = jnp.matmul(conv_ref.reshape(N, FC_IN), w_fc.T,
                        precision=jax.lax.Precision.HIGHEST) + b_fc
    ref = 1.0 / (1.0 + jnp.exp(-logits))

    assert out.shape == (N, 1)
    assert jnp.allclose(out, ref, atol=1e-4, rtol=1e-4), (out, ref)
    print("KERNEL_OK")
</pallas_src>

<mosaic_0001>
module attributes {stable_mosaic.version = 11 : i64} {
  func.func @fused_forward_kernel(%arg0: i32, %arg1: memref<27x2048xf32, #tpu.memory_space<vmem>>, %arg2: memref<16x27xf32, #tpu.memory_space<vmem>>, %arg3: memref<16x1xf32, #tpu.memory_space<vmem>>, %arg4: memref<16x1024xf32, #tpu.memory_space<vmem>>, %arg5: memref<1x1xf32, #tpu.memory_space<vmem>>, %arg6: memref<1x2xf32, #tpu.memory_space<vmem>>) attributes {dimension_semantics = [#tpu.dimension_semantics<arbitrary>], iteration_bounds = array<i64: 1>, scalar_prefetch = 0 : i64, scratch_operands = 0 : i64, tpu.core_type = #tpu.core_type<tc>, window_params = [{pipeline_mode = #tpu.pipeline_mode<synchronous>, transform_indices = @transform_0, window_bounds = array<i64: 27, 2048>}, {pipeline_mode = #tpu.pipeline_mode<synchronous>, transform_indices = @transform_1, window_bounds = array<i64: 16, 27>}, {pipeline_mode = #tpu.pipeline_mode<synchronous>, transform_indices = @transform_2, window_bounds = array<i64: 16, 1>}, {pipeline_mode = #tpu.pipeline_mode<synchronous>, transform_indices = @transform_3, window_bounds = array<i64: 16, 1024>}, {pipeline_mode = #tpu.pipeline_mode<synchronous>, transform_indices = @transform_4, window_bounds = array<i64: 1, 1>}, {pipeline_mode = #tpu.pipeline_mode<synchronous>, transform_indices = @transform_5, window_bounds = array<i64: 1, 2>}]} {
    %c0 = arith.constant 0 : index
    %c0_0 = arith.constant 0 : index
    %0 = vector.load %arg2[%c0, %c0_0] : memref<16x27xf32, #tpu.memory_space<vmem>>, vector<16x27xf32>
    %c0_1 = arith.constant 0 : index
    %c0_2 = arith.constant 0 : index
    %1 = vector.load %arg1[%c0_1, %c0_2] : memref<27x2048xf32, #tpu.memory_space<vmem>>, vector<27x2048xf32>
    %cst = arith.constant dense<0.000000e+00> : vector<16x2048xf32>
    %2 = tpu.matmul %0, %1, %cst {dimension_numbers = #tpu.dot_dimension_numbers<[1], [0], [0], [1], [0, 0, 1, 1], [], []>} : vector<16x27xf32>, vector<27x2048xf32>, vector<16x2048xf32> -> vector<16x2048xf32>
    %c0_3 = arith.constant 0 : index
    %c0_4 = arith.constant 0 : index
    %3 = vector.load %arg3[%c0_3, %c0_4] : memref<16x1xf32, #tpu.memory_space<vmem>>, vector<16x1xf32>
    %4 = vector.broadcast %3 : vector<16x1xf32> to vector<16x2048xf32>
    %5 = arith.addf %2, %4 : vector<16x2048xf32>
    %cst_5 = arith.constant 0.000000e+00 : f32
    %6 = vector.broadcast %cst_5 : f32 to vector<16x2048xf32>
    %7 = arith.maximumf %5, %6 : vector<16x2048xf32>
    %c0_6 = arith.constant 0 : index
    %c0_7 = arith.constant 0 : index
    %8 = vector.load %arg4[%c0_6, %c0_7] : memref<16x1024xf32, #tpu.memory_space<vmem>>, vector<16x1024xf32>
    %9 = vector.extract_strided_slice %7 {offsets = [0, 0], sizes = [16, 1024], strides = [1, 1]} : vector<16x2048xf32> to vector<16x1024xf32>
    %10 = arith.mulf %9, %8 : vector<16x1024xf32>
    %cst_8 = arith.constant dense<0.000000e+00> : vector<16xf32>
    %11 = vector.multi_reduction <add>, %10, %cst_8 [1] : vector<16x1024xf32> to vector<16xf32>
    %12 = vector.shape_cast %11 : vector<16xf32> to vector<16x1xf32>
    %13 = vector.extract_strided_slice %7 {offsets = [0, 1024], sizes = [16, 1024], strides = [1, 1]} : vector<16x2048xf32> to vector<16x1024xf32>
    %14 = arith.mulf %13, %8 : vector<16x1024xf32>
    %cst_9 = arith.constant dense<0.000000e+00> : vector<16xf32>
    %15 = vector.multi_reduction <add>, %14, %cst_9 [1] : vector<16x1024xf32> to vector<16xf32>
    %16 = vector.shape_cast %15 : vector<16xf32> to vector<16x1xf32>
    %17 = tpu.concatenate %12, %16 in 1 : vector<16x1xf32>, vector<16x1xf32> -> vector<16x2xf32>
    %cst_10 = arith.constant dense<0.000000e+00> : vector<2xf32>
    %18 = vector.multi_reduction <add>, %17, %cst_10 [0] : vector<16x2xf32> to vector<2xf32>
    %19 = vector.shape_cast %18 : vector<2xf32> to vector<1x2xf32>
    %c0_11 = arith.constant 0 : index
    %c0_12 = arith.constant 0 : index
    %20 = vector.load %arg5[%c0_11, %c0_12] : memref<1x1xf32, #tpu.memory_space<vmem>>, vector<1x1xf32>
    %21 = vector.broadcast %20 : vector<1x1xf32> to vector<1x2xf32>
    %22 = arith.addf %19, %21 : vector<1x2xf32>
    %cst_13 = arith.constant 0.000000e+00 : f32
    %23 = vector.broadcast %cst_13 : f32 to vector<1x2xf32>
    %24 = arith.subf %23, %22 : vector<1x2xf32>
    %25 = math.exp %24 : vector<1x2xf32>
    %cst_14 = arith.constant 1.000000e+00 : f32
    %26 = vector.broadcast %cst_14 : f32 to vector<1x2xf32>
    %27 = arith.addf %26, %25 : vector<1x2xf32>
    %cst_15 = arith.constant 1.000000e+00 : f32
    %28 = vector.broadcast %cst_15 : f32 to vector<1x2xf32>
    %29 = arith.divf %28, %27 : vector<1x2xf32>
    %c0_16 = arith.constant 0 : index
    %c0_17 = arith.constant 0 : index
    %30 = vector.load %arg6[%c0_16, %c0_17] : memref<1x2xf32, #tpu.memory_space<vmem>>, vector<1x2xf32>
    tpu.vector_store %arg6[%c0_16, %c0_17], %29 {strides = array<i32>} : memref<1x2xf32, #tpu.memory_space<vmem>>, vector<1x2xf32>,
    return
  }
  func.func @transform_0(%arg0: i32) -> (i32, i32) {
    %c0_i32 = arith.constant 0 : i32
    %c0_i32_0 = arith.constant 0 : i32
    %c0_i32_1 = arith.constant 0 : i32
    return %c0_i32, %c0_i32_0 : i32, i32
  }
  func.func @transform_1(%arg0: i32) -> (i32, i32) {
    %c0_i32 = arith.constant 0 : i32
    %c0_i32_0 = arith.constant 0 : i32
    %c0_i32_1 = arith.constant 0 : i32
    return %c0_i32, %c0_i32_0 : i32, i32
  }
  func.func @transform_2(%arg0: i32) -> (i32, i32) {
    %c0_i32 = arith.constant 0 : i32
    %c0_i32_0 = arith.constant 0 : i32
    %c0_i32_1 = arith.constant 0 : i32
    return %c0_i32, %c0_i32_0 : i32, i32
  }
  func.func @transform_3(%arg0: i32) -> (i32, i32) {
    %c0_i32 = arith.constant 0 : i32
    %c0_i32_0 = arith.constant 0 : i32
    %c0_i32_1 = arith.constant 0 : i32
    return %c0_i32, %c0_i32_0 : i32, i32
  }
  func.func @transform_4(%arg0: i32) -> (i32, i32) {
    %c0_i32 = arith.constant 0 : i32
    %c0_i32_0 = arith.constant 0 : i32
    %c0_i32_1 = arith.constant 0 : i32
    return %c0_i32, %c0_i32_0 : i32, i32
  }
  func.func @transform_5(%arg0: i32) -> (i32, i32) {
    %c0_i32 = arith.constant 0 : i32
    %c0_i32_0 = arith.constant 0 : i32
    %c0_i32_1 = arith.constant 0 : i32
    return %c0_i32, %c0_i32_0 : i32, i32
  }
}

</mosaic_0001>

<bundles_post_ra>
// kernel: simple_model_forward.1
= control target key start
LH: loop header
LB: loop body
LE: loop exit
PB: predicated region body
PF: predicated region fallthrough
CT: control target
= control target key end

     0   :  { %s1254_s0 = inlined_call_operand.vmem [shape: f32[27,2048], index: 0, kind: input, shape index: {}]   ;;  %s1255_s1 = inlined_call_operand.vmem [shape: f32[16,27], index: 1, kind: input, shape index: {}]   ;;  %s1256_s2 = inlined_call_operand.vmem [shape: f32[16,1], index: 2, kind: input, shape index: {}]   ;;  %s1257_s3 = inlined_call_operand.vmem [shape: f32[16,1024], index: 3, kind: input, shape index: {}]   ;;  %s1258_s4 = inlined_call_operand.<no memory space> [shape: f32[1,1], index: 4, kind: input, shape index: {}]   ;;  %s1259_s5 = inlined_call_operand.hbm [shape: f32[1,2], index: 5, kind: output, shape index: {}]  }
   0x1   :  { %v10_v0 = vstv %s1258_s4 }
   0x2   :  { %11 = vst [vmem:[#allocation2] sm:$0x1] %v10_v0 }
   0x3   :  { %v73_v1 = vld [vmem:[%s1254_s0 + $0x180] sm:$0x7]  ;;  %vm108_vm0 = vcmask 1042432   ;;  %v74_v2 = vld [vmem:[%s1254_s0 + $0x188] sm:$0x7]  ;;  %v59_v7 = vld [vmem:[%s1254_s0 + $0x110] sm:$0xff] }
   0x4   :  { %v57_v3 = vld [vmem:[%s1254_s0 + $0x100] sm:$0xff]  ;;  %699 = vmatpush.msk.msra.mxu0 %vm108_vm0, %v73_v1  ;;  %702 = vmatpush.msk.msra.mxu1 %vm108_vm0, %v74_v2  ;;  %v75_v4 = vld [vmem:[%s1254_s0 + $0x190] sm:$0x7]  ;;  %v76_v5 = vld [vmem:[%s1254_s0 + $0x198] sm:$0x7]  ;;  %vm101_vm1 = vcmask 220160  }
   0x5   :  { %v58_v6 = vld [vmem:[%s1254_s0 + $0x108] sm:$0xff]  ;;  %705 = vmatpush.msk.msra.mxu2 %vm108_vm0, %v75_v4  ;;  %708 = vmatpush.msk.msra.mxu3 %vm108_vm0, %v76_v5  ;;  %v60_v8 = vld [vmem:[%s1254_s0 + $0x118] sm:$0xff]  ;;  %v41_v9 = vld [vmem:[%s1254_s0 + $0x80] sm:$0xff]  ;;  %v780_v30 = vmov 0  }
   0x6   :  { %170 = vmatpush.msra.mxu0 %v57_v3  ;;  %193 = vmatpush.msra.mxu1 %v58_v6  ;;  %v42_v10 = vld [vmem:[%s1254_s0 + $0x88] sm:$0xff]  ;;  %v43_v11 = vld [vmem:[%s1254_s0 + $0x90] sm:$0xff]  ;;  %v44_v12 = vld [vmem:[%s1254_s0 + $0x98] sm:$0xff] }
   0x7   :  { %216 = vmatpush.msra.mxu2 %v59_v7  ;;  %239 = vmatpush.msra.mxu3 %v60_v8  ;;  %v25_v13 = vld [vmem:[%s1254_s0] sm:$0xff]  ;;  %v26_v14 = vld [vmem:[%s1254_s0 + $0x8] sm:$0xff]  ;;  %v27_v15 = vld [vmem:[%s1254_s0 + $0x10] sm:$0xff] }
   0x8   :  { %171 = vmatpush.msra.mxu0 %v41_v9  ;;  %194 = vmatpush.msra.mxu1 %v42_v10  ;;  %v28_v16 = vld [vmem:[%s1254_s0 + $0x18] sm:$0xff]  ;;  %v870_v17 = vld [vmem:[%s1255_s1] sm:$0xff]  ;;  %v79_v18 = vld [vmem:[%s1254_s0 + $0x1b0] sm:$0x7] }
   0x9   :  { %217 = vmatpush.msra.mxu2 %v43_v11  ;;  %240 = vmatpush.msra.mxu3 %v44_v12  ;;  %v77_v19 = vld [vmem:[%s1254_s0 + $0x1a0] sm:$0x7]  ;;  %v80_v20 = vld [vmem:[%s1254_s0 + $0x1b8] sm:$0x7]  ;;  %v78_v21 = vld [vmem:[%s1254_s0 + $0x1a8] sm:$0x7] }
   0xa   :  { %172 = vmatpush.msra.mxu0 %v25_v13  ;;  %195 = vmatpush.msra.mxu1 %v26_v14  ;;  %v63_v22 = vld [vmem:[%s1254_s0 + $0x130] sm:$0xff]  ;;  %v61_v23 = vld [vmem:[%s1254_s0 + $0x120] sm:$0xff]  ;;  %v64_v24 = vld [vmem:[%s1254_s0 + $0x138] sm:$0xff] }
   0xb   :  { %218 = vmatpush.msra.mxu2 %v27_v15  ;;  %241 = vmatpush.msra.mxu3 %v28_v16  ;;  %v62_v25 = vld [vmem:[%s1254_s0 + $0x128] sm:$0xff]  ;;  %v47_v26 = vld [vmem:[%s1254_s0 + $0xb0] sm:$0xff]  ;;  %v45_v27 = vld [vmem:[%s1254_s0 + $0xa0] sm:$0xff] }
   0xc   :  { %700 = vmatmul.msk.f32.vlgmr.msra.gmra.mxu0 %vm101_vm1, %v870_v17  ;;  %703 = vmatmul.msk.f32.vlgmr.msra.gmra.mxu1 %vm101_vm1, %v870_v17  ;;  %v48_v28 = vld [vmem:[%s1254_s0 + $0xb8] sm:$0xff]  ;;  %v920_v29 = vld [vmem:[%s1255_s1 + $0x8] sm:$0xff]  ;;  %v31_v32 = vld [vmem:[%s1254_s0 + $0x30] sm:$0xff] }
   0xd   :  { %706 = vmatmul.msk.f32.vlgmr.msra.gmra.mxu2 %vm101_vm1, %v870_v17  ;;  %709 = vmatmul.msk.f32.vlgmr.msra.gmra.mxu3 %vm101_vm1, %v870_v17  ;;  %v46_v31 = vld [vmem:[%s1254_s0 + $0xa8] sm:$0xff]  ;;  %v89_v33 = vld [vmem:[%s1256_s2] sm:$0xff]  ;;  %v32_v35 = vld [vmem:[%s1254_s0 + $0x38] sm:$0xff] }
   0xe   :  { %717 = vmatpush.msk.msrb.mxu2 %vm108_vm0, %v79_v18  ;;  %711 = vmatpush.msk.msrb.mxu0 %vm108_vm0, %v77_v19  ;;  %v29_v34 = vld [vmem:[%s1254_s0 + $0x20] sm:$0xff]  ;;  %v30_v36 = vld [vmem:[%s1254_s0 + $0x28] sm:$0xff]  ;;  %v83_v37 = vld [vmem:[%s1254_s0 + $0x1d0] sm:$0x7] }
   0xf   :  { %720 = vmatpush.msk.msrb.mxu3 %vm108_vm0, %v80_v20  ;;  %714 = vmatpush.msk.msrb.mxu1 %vm108_vm0, %v78_v21  ;;  %v81_v38 = vld [vmem:[%s1254_s0 + $0x1c0] sm:$0x7]  ;;  %v84_v39 = vld [vmem:[%s1254_s0 + $0x1d8] sm:$0x7]  ;;  %v82_v40 = vld [vmem:[%s1254_s0 + $0x1c8] sm:$0x7] }
  0x10   :  { %308 = vmatpush.msrb.mxu2 %v63_v22  ;;  %262 = vmatpush.msrb.mxu0 %v61_v23  ;;  %v67_v41 = vld [vmem:[%s1254_s0 + $0x150] sm:$0xff]  ;;  %v65_v42 = vld [vmem:[%s1254_s0 + $0x140] sm:$0xff] }
  0x11   :  { %331 = vmatpush.msrb.mxu3 %v64_v24  ;;  %285 = vmatpush.msrb.mxu1 %v62_v25 }
  0x12   :  { %309 = vmatpush.msrb.mxu2 %v47_v26  ;;  %263 = vmatpush.msrb.mxu0 %v45_v27 }
  0x13   :  { %332 = vmatpush.msrb.mxu3 %v48_v28  ;;  %749 = vset.pattern.permute.xlu0 %v780_v30 }
  0x14   :  { %701 = vmatmul.msk.f32.gmra.mxu0 %vm101_vm1, %v920_v29  ;;  %704 = vmatmul.msk.f32.gmra.mxu1 %vm101_vm1, %v920_v29 }
  0x15   :  { %707 = vmatmul.msk.f32.gmra.mxu2 %vm101_vm1, %v920_v29  ;;  %710 = vmatmul.msk.f32.gmra.mxu3 %vm101_vm1, %v920_v29 }
  0x16   :  { %286 = vmatpush.msrb.mxu1 %v46_v31  ;;  %310 = vmatpush.msrb.mxu2 %v31_v32 }
  0x17   :  { %93 = vperm.xlu0 %749, %v89_v33   ;;  %264 = vmatpush.msrb.mxu0 %v29_v34 }
  0x18   :  { %333 = vmatpush.msrb.mxu3 %v32_v35  ;;  %287 = vmatpush.msrb.mxu1 %v30_v36 }
  0x19   :  { %729 = vmatpush.msk.msra.mxu2 %vm108_vm0, %v83_v37  ;;  %723 = vmatpush.msk.msra.mxu0 %vm108_vm0, %v81_v38 }
  0x1a   :  { %12 = vsyncpa [#allocation4], 0  ;;  %732 = vmatpush.msk.msra.mxu3 %vm108_vm0, %v84_v39  ;;  %726 = vmatpush.msk.msra.mxu1 %vm108_vm0, %v82_v40  ;;  %v68_v43 = vld [vmem:[%s1254_s0 + $0x158] sm:$0xff]  ;;  %v66_v44 = vld [vmem:[%s1254_s0 + $0x148] sm:$0xff]  ;;  %vm641_vm2 = vcmask 7168   ;;  %vm644_vm3 = vcmask 15360  }
  0x1b   :  { %400 = vmatpush.msra.mxu2 %v67_v41  ;;  %354 = vmatpush.msra.mxu0 %v65_v42  ;;  %v90_v45 = vld [vmem:[%s1256_s2 + $0x8] sm:$0xff]  ;;  %v51_v46 = vld [vmem:[%s1254_s0 + $0xd0] sm:$0xff]  ;;  %v49_v47 = vld [vmem:[%s1254_s0 + $0xc0] sm:$0xff]  ;;  %s690_s26 = sshll.u32 %s1259_s5, 4  ;;  %vm681_vm7 = vcmask 8192   ;;  %s691_s26 = int_to_ptr.hbm [resolvable:$true] %s690_s26 }
  0x1c   :  { %712 = vmatmul.msk.f32.vlgmr.msrb.gmra.mxu0 %vm101_vm1, %v870_v17  ;;  %715 = vmatmul.msk.f32.vlgmr.msrb.gmra.mxu1 %vm101_vm1, %v870_v17  ;;  %v52_v48 = vld [vmem:[%s1254_s0 + $0xd8] sm:$0xff]  ;;  %v50_v49 = vld [vmem:[%s1254_s0 + $0xc8] sm:$0xff]  ;;  %v35_v50 = vld [vmem:[%s1254_s0 + $0x50] sm:$0xff] }
  0x1d   :  { %718 = vmatmul.msk.f32.vlgmr.msrb.gmra.mxu2 %vm101_vm1, %v870_v17  ;;  %721 = vmatmul.msk.f32.vlgmr.msrb.gmra.mxu3 %vm101_vm1, %v870_v17  ;;  %v33_v51 = vld [vmem:[%s1254_s0 + $0x40] sm:$0xff]  ;;  %v36_v52 = vld [vmem:[%s1254_s0 + $0x58] sm:$0xff]  ;;  %v34_v53 = vld [vmem:[%s1254_s0 + $0x48] sm:$0xff] }
  0x1e   :  { %423 = vmatpush.msra.mxu3 %v68_v43  ;;  %377 = vmatpush.msra.mxu1 %v66_v44  ;;  %v87_v54 = vld [vmem:[%s1254_s0 + $0x1f0] sm:$0x7]  ;;  %v85_v55 = vld [vmem:[%s1254_s0 + $0x1e0] sm:$0x7]  ;;  %v88_v56 = vld [vmem:[%s1254_s0 + $0x1f8] sm:$0x7] }
  0x1f   :  { %98 = vperm.xlu0 %749, %v90_v45   ;;  %401 = vmatpush.msra.mxu2 %v51_v46  ;;  %v86_v57 = vld [vmem:[%s1254_s0 + $0x1e8] sm:$0x7]  ;;  %v71_v58 = vld [vmem:[%s1254_s0 + $0x170] sm:$0xff]  ;;  %v69_v59 = vld [vmem:[%s1254_s0 + $0x160] sm:$0xff] }
  0x20   :  { %355 = vmatpush.msra.mxu0 %v49_v47  ;;  %424 = vmatpush.msra.mxu3 %v52_v48  ;;  %v72_v60 = vld [vmem:[%s1254_s0 + $0x178] sm:$0xff]  ;;  %v70_v61 = vld [vmem:[%s1254_s0 + $0x168] sm:$0xff]  ;;  %v55_v62 = vld [vmem:[%s1254_s0 + $0xf0] sm:$0xff] }
  0x21   :  { %378 = vmatpush.msra.mxu1 %v50_v49  ;;  %402 = vmatpush.msra.mxu2 %v35_v50  ;;  %v53_v63 = vld [vmem:[%s1254_s0 + $0xe0] sm:$0xff]  ;;  %v56_v0 = vld [vmem:[%s1254_s0 + $0xf8] sm:$0xff]  ;;  %v54_v1 = vld [vmem:[%s1254_s0 + $0xe8] sm:$0xff] }
  0x22   :  { %356 = vmatpush.msra.mxu0 %v33_v51  ;;  %425 = vmatpush.msra.mxu3 %v36_v52  ;;  %v39_v2 = vld [vmem:[%s1254_s0 + $0x70] sm:$0xff]  ;;  %v37_v3 = vld [vmem:[%s1254_s0 + $0x60] sm:$0xff]  ;;  %v40_v4 = vld [vmem:[%s1254_s0 + $0x78] sm:$0xff] }
  0x23   :  { %379 = vmatpush.msra.mxu1 %v34_v53  ;;  %741 = vmatpush.msk.msrb.mxu2 %vm108_vm0, %v87_v54  ;;  %v38_v5 = vld [vmem:[%s1254_s0 + $0x68] sm:$0xff]  ;;  %v654_v6 = vld [vmem:[#allocation2] sm:$0x1]  ;;  %v1124_v24 = vld [vmem:[%s1257_s3 + $0x10] sm:$0xff] }
  0x24   :  { %713 = vmatmul.msk.f32.gmra.mxu0 %vm101_vm1, %v920_v29  ;;  %716 = vmatmul.msk.f32.gmra.mxu1 %vm101_vm1, %v920_v29  ;;  %v1113_v20 = vld [vmem:[%s1257_s3] sm:$0xff]  ;;  %v1118_v21 = vld [vmem:[%s1257_s3 + $0x8] sm:$0xff]  ;;  %v1134_v31 = vld [vmem:[%s1257_s3 + $0x18] sm:$0xff] }
  0x25   :  { %719 = vmatmul.msk.f32.gmra.mxu2 %vm101_vm1, %v920_v29  ;;  %722 = vmatmul.msk.f32.gmra.mxu3 %vm101_vm1, %v920_v29  ;;  %v1140_v40 = vld [vmem:[%s1257_s3 + $0x40] sm:$0xff]  ;;  %v1145_v41 = vld [vmem:[%s1257_s3 + $0x48] sm:$0xff]  ;;  %v1159_v49 = vld [vmem:[%s1257_s3 + $0x50] sm:$0xff] }
  0x26   :  { %735 = vmatpush.msk.msrb.mxu0 %vm108_vm0, %v85_v55  ;;  %744 = vmatpush.msk.msrb.mxu3 %vm108_vm0, %v88_v56  ;;  %v1154_v47 = vld [vmem:[%s1257_s3 + $0x20] sm:$0xff]  ;;  %v1167_v55 = vld [vmem:[%s1257_s3 + $0x28] sm:$0xff] }
  0x27   :  { %738 = vmatpush.msk.msrb.mxu1 %vm108_vm0, %v86_v57  ;;  %492 = vmatpush.msrb.mxu2 %v71_v58 }
  0x28   :  { %446 = vmatpush.msrb.mxu0 %v69_v59  ;;  %515 = vmatpush.msrb.mxu3 %v72_v60  ;;  %v1173_v59 = vld [vmem:[%s1257_s3 + $0x58] sm:$0xff] }
  0x29   :  { %469 = vmatpush.msrb.mxu1 %v70_v61  ;;  %493 = vmatpush.msrb.mxu2 %v55_v62 }
  0x2a   :  { %447 = vmatpush.msrb.mxu0 %v53_v63  ;;  %516 = vmatpush.msrb.mxu3 %v56_v0 }
  0x2b   :  { %470 = vmatpush.msrb.mxu1 %v54_v1  ;;  %494 = vmatpush.msrb.mxu2 %v39_v2 }
  0x2c   :  { %724 = vmatmul.msk.f32.vlgmr.msra.gmra.mxu0 %vm101_vm1, %v870_v17  ;;  %727 = vmatmul.msk.f32.vlgmr.msra.gmra.mxu1 %vm101_vm1, %v870_v17 }
  0x2d   :  { %730 = vmatmul.msk.f32.vlgmr.msra.gmra.mxu2 %vm101_vm1, %v870_v17  ;;  %733 = vmatmul.msk.f32.vlgmr.msra.gmra.mxu3 %vm101_vm1, %v870_v17 }
  0x2e   :  { %448 = vmatpush.msrb.mxu0 %v37_v3  ;;  %517 = vmatpush.msrb.mxu3 %v40_v4 }
  0x2f   :  { %471 = vmatpush.msrb.mxu1 %v38_v5  ;;  %657 = vperm.xlu0 %749, %v654_v6   ;;  %v1181_v5 = vld [vmem:[%s1257_s3 + $0x30] sm:$0xff] }
  0x34   :  { %725 = vmatmul.msk.f32.gmra.mxu0 %vm101_vm1, %v920_v29  ;;  %728 = vmatmul.msk.f32.gmra.mxu1 %vm101_vm1, %v920_v29 }
  0x35   :  { %731 = vmatmul.msk.f32.gmra.mxu2 %vm101_vm1, %v920_v29  ;;  %734 = vmatmul.msk.f32.gmra.mxu3 %vm101_vm1, %v920_v29 }
  0x3c   :  { %736 = vmatmul.msk.f32.vlgmr.msrb.gmra.mxu0 %vm101_vm1, %v870_v17  ;;  %739 = vmatmul.msk.f32.vlgmr.msrb.gmra.mxu1 %vm101_vm1, %v870_v17 }
  0x3d   :  { %742 = vmatmul.msk.f32.vlgmr.msrb.gmra.mxu2 %vm101_vm1, %v870_v17  ;;  %745 = vmatmul.msk.f32.vlgmr.msrb.gmra.mxu3 %vm101_vm1, %v870_v17 }
  0x44   :  { %737 = vmatmul.msk.f32.gmra.mxu0 %vm101_vm1, %v920_v29  ;;  %740 = vmatmul.msk.f32.gmra.mxu1 %vm101_vm1, %v920_v29 }
  0x45   :  { %743 = vmatmul.msk.f32.gmra.mxu2 %vm101_vm1, %v920_v29  ;;  %746 = vmatmul.msk.f32.gmra.mxu3 %vm101_vm1, %v920_v29 }
  0x89   :  { %v174_v7 = vpop.f32.mrf.mxu0  ;;  %v197_v8 = vpop.f32.mrf.mxu1 }
  0x8a   :  { %v1103_v9 = vpop.permute.xlu0 %93 }
  0x8b   :  { %v175_v10 = vadd.f32 %v174_v7, %v1103_v9  ;;  %v198_v11 = vadd.f32 %v197_v8, %v1103_v9  ;;  %v1188_v8 = vld [vmem:[%s1257_s3 + $0x38] sm:$0xff] }
  0x8d   :  { %v525_v17 = vmax.f32 %v175_v10, 0.0  ;;  %v526_v18 = vmax.f32 %v198_v11, 0.0 }
  0x8f   :  { %v573_v27 = vmul.f32 %v1113_v20, %v525_v17  ;;  %v574_v28 = vmul.f32 %v1118_v21, %v526_v18  ;;  %v1200_v18 = vld [vmem:[%s1257_s3 + $0x68] sm:$0xff] }
  0x90   :  { %v220_v12 = vpop.f32.mrf.mxu2  ;;  %v243_v13 = vpop.f32.mrf.mxu3 }
  0x91   :  { %v221_v14 = vadd.f32 %v220_v12, %v1103_v9  ;;  %v177_v15 = vpop.f32.mrf.mxu0  ;;  %v200_v16 = vpop.f32.mrf.mxu1  ;;  %v244_v23 = vadd.f32 %v243_v13, %v1103_v9  ;;  %v589_v39 = vadd.f32 %v574_v28, %v573_v27  ;;  %v1194_v13 = vld [vmem:[%s1257_s3 + $0x60] sm:$0xff] }
  0x92   :  { %v1108_v19 = vpop.permute.xlu0 %98 }
  0x93   :  { %v527_v22 = vmax.f32 %v221_v14, 0.0  ;;  %v178_v25 = vadd.f32 %v177_v15, %v1108_v19  ;;  %v201_v26 = vadd.f32 %v200_v16, %v1108_v19  ;;  %v528_v30 = vmax.f32 %v244_v23, 0.0 }
  0x95   :  { %v575_v29 = vmul.f32 %v1124_v24, %v527_v22  ;;  %v541_v34 = vmax.f32 %v178_v25, 0.0  ;;  %v542_v35 = vmax.f32 %v201_v26, 0.0  ;;  %v576_v44 = vmul.f32 %v1134_v31, %v528_v30 }
  0x97   :  { %v590_v48 = vadd.f32 %v589_v39, %v575_v29  ;;  %v581_v51 = vmul.f32 %v1140_v40, %v541_v34  ;;  %v582_v52 = vmul.f32 %v1145_v41, %v542_v35  ;;  %v1215_v39 = vld [vmem:[%s1257_s3 + $0x78] sm:$0xff] }
  0x98   :  { %v223_v32 = vpop.f32.mrf.mxu2  ;;  %v246_v33 = vpop.f32.mrf.mxu3 }
  0x99   :  { %v224_v36 = vadd.f32 %v223_v32, %v1108_v19  ;;  %v266_v37 = vpop.f32.mrf.mxu0  ;;  %v289_v38 = vpop.f32.mrf.mxu1  ;;  %v247_v46 = vadd.f32 %v246_v33, %v1108_v19  ;;  %v591_v58 = vadd.f32 %v590_v48, %v576_v44  ;;  %v598_v62 = vadd.f32 %v582_v52, %v581_v51 }
  0x9a   :  { %v267_v42 = vadd.f32 %v266_v37, %v1103_v9  ;;  %v290_v43 = vadd.f32 %v289_v38, %v1103_v9  ;;  %v1210_v38 = vld [vmem:[%s1257_s3 + $0x70] sm:$0xff]  ;;  %s781_s3 = smov [#allocation3]  }
  0x9b   :  { %v543_v45 = vmax.f32 %v224_v36, 0.0  ;;  %v544_v57 = vmax.f32 %v247_v46, 0.0  ;;  %s688_s23 = sshll.u32 %s781_s3, 4  ;;  %s689_s23 = int_to_ptr.vmem [resolvable:$true] %s688_s23 }
  0x9c   :  { %v529_v50 = vmax.f32 %v267_v42, 0.0  ;;  %v530_v53 = vmax.f32 %v290_v43, 0.0 }
  0x9d   :  { %v583_v56 = vmul.f32 %v1159_v49, %v543_v45  ;;  %v584_v10 = vmul.f32 %v1173_v59, %v544_v57 }
  0x9e   :  { %v577_v54 = vmul.f32 %v1154_v47, %v529_v50  ;;  %v578_v63 = vmul.f32 %v1167_v55, %v530_v53 }
  0x9f   :  { %v599_v14 = vadd.f32 %v598_v62, %v583_v56 }
  0xa0   :  { %v312_v60 = vpop.f32.mrf.mxu2  ;;  %v335_v61 = vpop.f32.mrf.mxu3  ;;  %v592_v4 = vadd.f32 %v591_v58, %v577_v54 }
  0xa1   :  { %v313_v0 = vadd.f32 %v312_v60, %v1103_v9  ;;  %v336_v1 = vadd.f32 %v335_v61, %v1103_v9  ;;  %v269_v2 = vpop.f32.mrf.mxu0  ;;  %v292_v3 = vpop.f32.mrf.mxu1  ;;  %v600_v27 = vadd.f32 %v599_v14, %v584_v10 }
  0xa2   :  { %v270_v6 = vadd.f32 %v269_v2, %v1108_v19  ;;  %v293_v7 = vadd.f32 %v292_v3, %v1108_v19  ;;  %v593_v23 = vadd.f32 %v592_v4, %v578_v63 }
  0xa3   :  { %v531_v11 = vmax.f32 %v313_v0, 0.0  ;;  %v532_v12 = vmax.f32 %v336_v1, 0.0 }
  0xa4   :  { %v545_v15 = vmax.f32 %v270_v6, 0.0  ;;  %v546_v16 = vmax.f32 %v293_v7, 0.0 }
  0xa5   :  { %v579_v17 = vmul.f32 %v1181_v5, %v531_v11  ;;  %v580_v22 = vmul.f32 %v1188_v8, %v532_v12 }
  0xa6   :  { %v585_v25 = vmul.f32 %v1194_v13, %v545_v15  ;;  %v586_v28 = vmul.f32 %v1200_v18, %v546_v16 }
  0xa7   :  { %v594_v26 = vadd.f32 %v593_v23, %v579_v17 }
  0xa8   :  { %v315_v29 = vpop.f32.mrf.mxu2  ;;  %v338_v30 = vpop.f32.mrf.mxu3  ;;  %v601_v37 = vadd.f32 %v600_v27, %v585_v25 }
  0xa9   :  { %v316_v32 = vadd.f32 %v315_v29, %v1108_v19  ;;  %v339_v33 = vadd.f32 %v338_v30, %v1108_v19  ;;  %v358_v34 = vpop.f32.mrf.mxu0  ;;  %v381_v35 = vpop.f32.mrf.mxu1  ;;  %v595_v36 = vadd.f32 %v594_v26, %v580_v22 }
  0xaa   :  { %v359_v44 = vadd.f32 %v358_v34, %v1103_v9  ;;  %v382_v48 = vadd.f32 %v381_v35, %v1103_v9  ;;  %v602_v50 = vadd.f32 %v601_v37, %v586_v28 }
  0xab   :  { %v547_v42 = vmax.f32 %v316_v32, 0.0  ;;  %v548_v43 = vmax.f32 %v339_v33, 0.0  ;;  %596 = vadd.xlane.f32.xlu1 %v595_v36 }
  0xac   :  { %v533_v54 = vmax.f32 %v359_v44, 0.0  ;;  %v534_v56 = vmax.f32 %v382_v48, 0.0 }
  0xad   :  { %v587_v45 = vmul.f32 %v1210_v38, %v547_v42  ;;  %v588_v46 = vmul.f32 %v1215_v39, %v548_v43 }
  0xae   :  { %v607_v2 = vmul.f32 %v1113_v20, %v533_v54  ;;  %v608_v3 = vmul.f32 %v1118_v21, %v534_v56 }
  0xaf   :  { %v603_v51 = vadd.f32 %v602_v50, %v587_v45 }
  0xb0   :  { %v404_v52 = vpop.f32.mrf.mxu2  ;;  %v427_v53 = vpop.f32.mrf.mxu3  ;;  %v623_v14 = vadd.f32 %v608_v3, %v607_v2 }
  0xb1   :  { %v405_v57 = vadd.f32 %v404_v52, %v1103_v9  ;;  %v361_v58 = vpop.f32.mrf.mxu0  ;;  %v384_v60 = vpop.f32.mrf.mxu1  ;;  %v604_v61 = vadd.f32 %v603_v51, %v588_v46  ;;  %v428_v63 = vadd.f32 %v427_v53, %v1103_v9 }
  0xb2   :  { %v362_v0 = vadd.f32 %v361_v58, %v1108_v19  ;;  %v385_v1 = vadd.f32 %v384_v60, %v1108_v19 }
  0xb3   :  { %v535_v62 = vmax.f32 %v405_v57, 0.0  ;;  %605 = vadd.xlane.f32.xlu1 %v604_v61  ;;  %v536_v6 = vmax.f32 %v428_v63, 0.0 }
  0xb4   :  { %v549_v7 = vmax.f32 %v362_v0, 0.0  ;;  %v550_v10 = vmax.f32 %v385_v1, 0.0 }
  0xb5   :  { %v609_v4 = vmul.f32 %v1124_v24, %v535_v62  ;;  %v610_v20 = vmul.f32 %v1134_v31, %v536_v6 }
  0xb6   :  { %v615_v24 = vmul.f32 %v1140_v40, %v549_v7  ;;  %v616_v26 = vmul.f32 %v1145_v41, %v550_v10 }
  0xb7   :  { %v624_v25 = vadd.f32 %v623_v14, %v609_v4 }
  0xb8   :  { %v407_v11 = vpop.f32.mrf.mxu2  ;;  %v430_v12 = vpop.f32.mrf.mxu3  ;;  %v632_v34 = vadd.f32 %v616_v26, %v615_v24 }
  0xb9   :  { %v408_v15 = vadd.f32 %v407_v11, %v1108_v19  ;;  %v450_v16 = vpop.f32.mrf.mxu0  ;;  %v473_v17 = vpop.f32.mrf.mxu1  ;;  %v431_v28 = vadd.f32 %v430_v12, %v1108_v19  ;;  %v625_v32 = vadd.f32 %v624_v25, %v610_v20 }
  0xba   :  { %v451_v22 = vadd.f32 %v450_v16, %v1103_v9  ;;  %v474_v23 = vadd.f32 %v473_v17, %v1103_v9 }
  0xbb   :  { %v551_v21 = vmax.f32 %v408_v15, 0.0  ;;  %v552_v37 = vmax.f32 %v431_v28, 0.0 }
  0xbc   :  { %v537_v27 = vmax.f32 %v451_v22, 0.0  ;;  %v538_v30 = vmax.f32 %v474_v23, 0.0  ;;  %v658_v23 = vpop.permute.xlu0 %657 }
  0xbd   :  { %v617_v33 = vmul.f32 %v1159_v49, %v551_v21  ;;  %v618_v51 = vmul.f32 %v1173_v59, %v552_v37  ;;  %v660_v25 = vperm.slane %v658_v23, 0 }
  0xbe   :  { %v611_v29 = vmul.f32 %v1154_v47, %v537_v27  ;;  %v612_v44 = vmul.f32 %v1167_v55, %v538_v30 }
  0xbf   :  { %v633_v47 = vadd.f32 %v632_v34, %v617_v33 }
  0xc0   :  { %v496_v35 = vpop.f32.mrf.mxu2  ;;  %v519_v36 = vpop.f32.mrf.mxu3  ;;  %v626_v42 = vadd.f32 %v625_v32, %v611_v29 }
  0xc1   :  { %v497_v31 = vadd.f32 %v496_v35, %v1103_v9  ;;  %v520_v40 = vadd.f32 %v519_v36, %v1103_v9  ;;  %v453_v43 = vpop.f32.mrf.mxu0  ;;  %v476_v41 = vpop.f32.mrf.mxu1  ;;  %v634_v9 = vadd.f32 %v633_v47, %v618_v51 }
  0xc2   :  { %v454_v45 = vadd.f32 %v453_v43, %v1108_v19  ;;  %v477_v49 = vadd.f32 %v476_v41, %v1108_v19  ;;  %v627_v53 = vadd.f32 %v626_v42, %v612_v44 }
  0xc3   :  { %v539_v46 = vmax.f32 %v497_v31, 0.0  ;;  %v540_v48 = vmax.f32 %v520_v40, 0.0 }
  0xc4   :  { %v553_v50 = vmax.f32 %v454_v45, 0.0  ;;  %v554_v56 = vmax.f32 %v477_v49, 0.0 }
  0xc5   :  { %v613_v52 = vmul.f32 %v1181_v5, %v539_v46  ;;  %v614_v57 = vmul.f32 %v1188_v8, %v540_v48 }
  0xc6   :  { %v619_v54 = vmul.f32 %v1194_v13, %v553_v50  ;;  %v620_v59 = vmul.f32 %v1200_v18, %v554_v56 }
  0xc7   :  { %v628_v55 = vadd.f32 %v627_v53, %v613_v52 }
  0xc8   :  { %v499_v58 = vpop.f32.mrf.mxu2  ;;  %v522_v60 = vpop.f32.mrf.mxu3  ;;  %v635_v61 = vadd.f32 %v634_v9, %v619_v54 }
  0xc9   :  { %v500_v62 = vadd.f32 %v499_v58, %v1108_v19  ;;  %v523_v63 = vadd.f32 %v522_v60, %v1108_v19  ;;  %v629_v0 = vadd.f32 %v628_v55, %v614_v57 }
  0xca   :  { %v636_v2 = vadd.f32 %v635_v61, %v620_v59 }
  0xcb   :  { %v555_v1 = vmax.f32 %v500_v62, 0.0  ;;  %v556_v5 = vmax.f32 %v523_v63, 0.0  ;;  %630 = vadd.xlane.f32.xlu2 %v629_v0 }
  0xcd   :  { %v621_v13 = vmul.f32 %v1210_v38, %v555_v1  ;;  %v622_v3 = vmul.f32 %v1215_v39, %v556_v5 }
  0xcf   :  { %v637_v8 = vadd.f32 %v636_v2, %v621_v13 }
  0xd1   :  { %v638_v4 = vadd.f32 %v637_v8, %v622_v3 }
  0xd3   :  { %639 = vadd.xlane.f32.xlu2 %v638_v4 }
 0x11e   :  { %v597_v6 = vpop.xlane.xlu1 %596 }
 0x126   :  { %v606_v19 = vpop.xlane.xlu1 %605 }
 0x13e   :  { %v631_v7 = vpop.xlane.xlu2 %630 }
 0x13f   :  { %v642_v10 = vsel %vm641_vm2, %v597_v6, %v631_v7 }
 0x140   :  { %v645_v18 = vsel %vm644_vm3, %v642_v10, 0.0 }
 0x146   :  { %v640_v11 = vpop.xlane.xlu2 %639 }
 0x147   :  { %v643_v12 = vsel %vm641_vm2, %v606_v19, %v640_v11 }
 0x148   :  { %v646_v14 = vsel %vm644_vm3, %v643_v12, 0.0 }
 0x149   :  { %v647_v15 = vadd.f32 %v646_v14, %v645_v18 }
 0x14b   :  { %v648_v16 = vrot.slane %v647_v15, 4 }
 0x14d   :  { %v649_v17 = vadd.f32 %v648_v16, %v647_v15 }
 0x14f   :  { %v650_v22 = vrot.slane %v649_v17, 2 }
 0x151   :  { %v651_v38 = vadd.f32 %v650_v22, %v649_v17 }
 0x153   :  { %v652_v39 = vrot.slane %v651_v38, 1 }
 0x155   :  { %v653_v20 = vadd.f32 %v652_v39, %v651_v38 }
 0x157   :  { %v661_v21 = vadd.f32 %v660_v25, %v653_v20 }
 0x159   :  { %v662_v24 = vsub.f32 0.0, %v661_v21 }
 0x15b   :  { %v663_v26 = vmul.f32 1.442695, %v662_v24 }
 0x15d   :  { %750 = vpow2.f32 %v663_v26 }
 0x163   :  { %v751_v27 = vpop.eup %750 }
 0x164   :  { %v665_v28 = vadd.f32 1.0, %v751_v27 }
 0x166   :  { %752 = vrcp.f32 %v665_v28  ;;  %v677_v33 = vand.u32 2147483648, %v665_v28  ;;  %v675_v35 = vand.u32 2147483647, %v665_v28  ;;  %vm671_vm5 = vweird.f32 %v665_v28 }
 0x168   :  { %v678_v37 = vor.u32 1.1754944e-38, %v677_v33  ;;  %vm676_vm8 = vcmp.eq.f32.partialorder %v675_v35, 8.507059e+37 }
 0x16c   :  { %v753_v29 = vpop.eup %752 }
 0x16d   :  { %v667_v30 = vmul.f32 %v753_v29, %v665_v28  ;;  %vm672_vm4 = vweird.f32 %v753_v29 }
 0x16e   :  { %vm673_vm6 = vmor %vm671_vm5, %vm672_vm4 }
 0x16f   :  { %v668_v32 = vsub.f32 1.0, %v667_v30 }
 0x171   :  { %v669_v34 = vmul.f32 %v753_v29, %v668_v32 }
 0x173   :  { %v670_v36 = vadd.f32 %v753_v29, %v669_v34 }
 0x175   :  { %v674_v42 = vsel %vm673_vm6, %v753_v29, %v670_v36 }
 0x176   :  { %v679_v31 = vsel %vm676_vm8, %v678_v37, %v674_v42 }
 0x177   :  { %682 = vst.msk [vmem:[#allocation3] sm:$0x1] %vm681_vm7, %v679_v31 }
 0x178   :  { %693 = dma.vmem_to_hbm [thread:$0]  %s689_s23, 16, %s691_s26, [#allocation4]  }
 0x179   :  { %778 = dma.done.wait [#allocation4], 16  }
 0x17a   :  { %779 = vsyncadd [#allocation4], 4294967280 }
 0x17b   :  { %698 = vsyncpa [#allocation4], 1 }

</bundles_post_ra>
